<compile_context>
chip_gen: v6e
topology: v6e:2x2x1
jax: 0.10.0
libtpu: 0.0.40
codegen_flags: <defaults>
</compile_context>

<pallas_src>
import functools

import jax
import jax.numpy as jnp
from jax.experimental import pallas as pl
from jax.experimental.pallas import tpu as pltpu

LANE = 128  # TPU lane width (last-dim tile)


def value_net_kernel(x_ref, w1_ref, b1_ref, w2t_ref, b2_ref, out_ref):
    # Layer 1: (TILE_B, S) @ (S, Hp) -> (TILE_B, Hp).  bf16 MXU operands
    # (x is cast in-kernel on the VPU), f32 accumulation; bias add + ReLU
    # stay f32 (v5e-safe epilogue).
    x = x_ref[...].astype(jnp.bfloat16)
    h = jnp.dot(x, w1_ref[...], preferred_element_type=jnp.float32)
    h = jnp.maximum(h + b1_ref[...], 0.0)                 # (TILE_B, Hp) f32

    # Layer 2, transposed: contract the hidden axis of w2t (1, Hp) with the
    # hidden axis of h (TILE_B, Hp) -> (1, TILE_B).  Batch lands on lanes, so
    # the store below is a dense, full-lane write of real data.
    v = jax.lax.dot_general(
        w2t_ref[...], h.astype(jnp.bfloat16),
        dimension_numbers=(((1,), (1,)), ((), ())),
        preferred_element_type=jnp.float32)                # (1, TILE_B) f32
    out_ref[...] = v + b2_ref[...]                         # broadcast (1,1)


def prepare_value_net_params(w1, b1, w2, b2):
    """One-time parameter prep (call once at init, NOT per forward).

    Pads the hidden dim to a lane multiple and casts MXU operands to bf16.
    INVARIANT: padded hidden columns of w1p / b1p / w2t are exact zeros, so
    after ReLU they contribute exactly 0 to the output; do not change this.
    """
    state_dim, hidden = w1.shape
    hid_pad = max(LANE, pl.cdiv(hidden, LANE) * LANE)

    w1p = jnp.zeros((state_dim, hid_pad), jnp.bfloat16)
    w1p = w1p.at[:, :hidden].set(w1.astype(jnp.bfloat16))
    b1p = jnp.zeros((1, hid_pad), jnp.float32)
    b1p = b1p.at[:, :hidden].set(b1.reshape(1, hidden).astype(jnp.float32))
    w2t = jnp.zeros((1, hid_pad), jnp.bfloat16)
    w2t = w2t.at[:, :hidden].set(w2.reshape(1, hidden).astype(jnp.bfloat16))
    b2p = b2.reshape(1, 1).astype(jnp.float32)
    return w1p, b1p, w2t, b2p


@functools.partial(jax.jit, static_argnames=("tile_b", "core_parallel"))
def value_net_forward(x, w1p, b1p, w2t, b2p, *, tile_b=1024,
                      core_parallel=False):
    """x: (B, state_dim) f32; prepped params from prepare_value_net_params.
    Returns (B, 1) f32."""
    B, state_dim = x.shape
    hid_pad = w1p.shape[1]

    # Lane-dense output tiles: tile_b must be a multiple of 128.  Clamp to the
    # (rounded-up) batch so tiny batches don't get over-padded.
    tile_b = max(LANE, (tile_b // LANE) * LANE)
    tile_b = min(tile_b, pl.cdiv(B, LANE) * LANE)
    b_pad = pl.cdiv(B, tile_b) * tile_b

    x = x.astype(jnp.float32)
    if b_pad != B:
        # Only copy x when the batch is ragged w.r.t. the tile.  Padded rows
        # produce garbage-free values that are sliced away below.
        x = jnp.pad(x, ((0, b_pad - B), (0, 0)))

    grid = (b_pad // tile_b,)
    semantics = (pltpu.CORE_PARALLEL if core_parallel else "parallel",)

    out = pl.pallas_call(
        value_net_kernel,
        out_shape=jax.ShapeDtypeStruct((1, b_pad), jnp.float32),
        grid=grid,
        in_specs=[
            # Streamed activations: one f32 batch tile per grid step.
            pl.BlockSpec((tile_b, state_dim), lambda i: (i, 0)),
            # Parameters: same block every step -> stay VMEM-resident.
            pl.BlockSpec((state_dim, hid_pad), lambda i: (0, 0)),
            pl.BlockSpec((1, hid_pad), lambda i: (0, 0)),
            pl.BlockSpec((1, hid_pad), lambda i: (0, 0)),
            pl.BlockSpec((1, 1), lambda i: (0, 0)),
        ],
        out_specs=pl.BlockSpec((1, tile_b), lambda i: (0, i)),
        compiler_params=pltpu.CompilerParams(
            dimension_semantics=semantics,
        ),
    )(x, w1p, b1p, w2t, b2p)

    # Lane-dense (1, b_pad) row of per-batch values -> (B, 1).
    return out[0, :B].reshape(B, 1)


def reference_forward(x, w1, b1, w2, b2):
    # Same bf16-operand / f32-accumulate math path as the kernel.
    xb = x.astype(jnp.bfloat16)
    w1b = w1.astype(jnp.bfloat16)
    w2b = w2.reshape(w1.shape[1], 1).astype(jnp.bfloat16)
    h = jnp.dot(xb, w1b, preferred_element_type=jnp.float32) + b1.reshape(1, -1)
    h = jnp.maximum(h, 0.0)
    return jnp.dot(h.astype(jnp.bfloat16), w2b,
                   preferred_element_type=jnp.float32) + b2.reshape(1, 1)


if __name__ == "__main__":
    batch = 256
    state_dim = 16
    hidden_dim = 32

    key = jax.random.PRNGKey(0)
    kx, k1, k2, k3, k4 = jax.random.split(key, 5)

    x = jax.random.normal(kx, (batch, state_dim), dtype=jnp.float32)

    # Deterministic synthetic parameters (roughly matching nn.Linear init scale).
    w1 = jax.random.uniform(k1, (state_dim, hidden_dim), jnp.float32,
                            minval=-1.0, maxval=1.0) / jnp.sqrt(state_dim)
    b1 = jax.random.uniform(k2, (hidden_dim,), jnp.float32,
                            minval=-1.0, maxval=1.0) / jnp.sqrt(state_dim)
    w2 = jax.random.uniform(k3, (hidden_dim, 1), jnp.float32,
                            minval=-1.0, maxval=1.0) / jnp.sqrt(hidden_dim)
    b2 = jax.random.uniform(k4, (1,), jnp.float32,
                            minval=-1.0, maxval=1.0) / jnp.sqrt(hidden_dim)

    # One-time parameter prep (hoisted out of the forward pass).
    params = prepare_value_net_params(w1, b1, w2, b2)

    # tile_b=128 so the demo exercises a multi-step (pipelined) grid: grid=(2,).
    out = value_net_forward(x, *params, tile_b=128)
    out = jax.block_until_ready(out)

    ref = reference_forward(x, w1, b1, w2, b2)
    assert out.shape == (batch, 1)
    assert jnp.allclose(out, ref, atol=1e-4, rtol=1e-4), (
        float(jnp.max(jnp.abs(out - ref))))

    # Ragged batch: exercises the pad-only-when-needed path.
    x_rag = x[:50]
    out_rag = jax.block_until_ready(value_net_forward(x_rag, *params, tile_b=128))
    ref_rag = reference_forward(x_rag, w1, b1, w2, b2)
    assert out_rag.shape == (50, 1)
    assert jnp.allclose(out_rag, ref_rag, atol=1e-4, rtol=1e-4), (
        float(jnp.max(jnp.abs(out_rag - ref_rag))))

    print("KERNEL_OK")
</pallas_src>

<mosaic_0001>
module attributes {stable_mosaic.version = 11 : i64} {
  func.func @value_net_kernel(%arg0: i32, %arg1: memref<128x16xf32, #tpu.memory_space<vmem>>, %arg2: memref<16x128xbf16, #tpu.memory_space<vmem>>, %arg3: memref<1x128xf32, #tpu.memory_space<vmem>>, %arg4: memref<1x128xbf16, #tpu.memory_space<vmem>>, %arg5: memref<1x1xf32, #tpu.memory_space<vmem>>, %arg6: memref<1x128xf32, #tpu.memory_space<vmem>>) attributes {dimension_semantics = [#tpu.dimension_semantics<parallel>], iteration_bounds = array<i64: 2>, scalar_prefetch = 0 : i64, scratch_operands = 0 : i64, tpu.core_type = #tpu.core_type<tc>, window_params = [{transform_indices = @transform_0, window_bounds = array<i64: 128, 16>}, {pipeline_mode = #tpu.pipeline_mode<synchronous>, transform_indices = @transform_1, window_bounds = array<i64: 16, 128>}, {pipeline_mode = #tpu.pipeline_mode<synchronous>, transform_indices = @transform_2, window_bounds = array<i64: 1, 128>}, {pipeline_mode = #tpu.pipeline_mode<synchronous>, transform_indices = @transform_3, window_bounds = array<i64: 1, 128>}, {pipeline_mode = #tpu.pipeline_mode<synchronous>, transform_indices = @transform_4, window_bounds = array<i64: 1, 1>}, {transform_indices = @transform_5, window_bounds = array<i64: 1, 128>}]} {
    %c0 = arith.constant 0 : index
    %c0_0 = arith.constant 0 : index
    %0 = vector.load %arg1[%c0, %c0_0] : memref<128x16xf32, #tpu.memory_space<vmem>>, vector<128x16xf32>
    %1 = arith.truncf %0 : vector<128x16xf32> to vector<128x16xbf16>
    %c0_1 = arith.constant 0 : index
    %c0_2 = arith.constant 0 : index
    %2 = vector.load %arg2[%c0_1, %c0_2] : memref<16x128xbf16, #tpu.memory_space<vmem>>, vector<16x128xbf16>
    %cst = arith.constant dense<0.000000e+00> : vector<128x128xf32>
    %3 = tpu.matmul %1, %2, %cst {dimension_numbers = #tpu.dot_dimension_numbers<[1], [0], [0], [1], [0, 0, 1, 1], [], []>} : vector<128x16xbf16>, vector<16x128xbf16>, vector<128x128xf32> -> vector<128x128xf32>
    %c0_3 = arith.constant 0 : index
    %c0_4 = arith.constant 0 : index
    %4 = vector.load %arg3[%c0_3, %c0_4] : memref<1x128xf32, #tpu.memory_space<vmem>>, vector<1x128xf32>
    %5 = vector.broadcast %4 : vector<1x128xf32> to vector<128x128xf32>
    %6 = arith.addf %3, %5 : vector<128x128xf32>
    %cst_5 = arith.constant 0.000000e+00 : f32
    %7 = vector.broadcast %cst_5 : f32 to vector<128x128xf32>
    %8 = arith.maximumf %6, %7 : vector<128x128xf32>
    %c0_6 = arith.constant 0 : index
    %c0_7 = arith.constant 0 : index
    %9 = vector.load %arg4[%c0_6, %c0_7] : memref<1x128xbf16, #tpu.memory_space<vmem>>, vector<1x128xbf16>
    %10 = arith.truncf %8 : vector<128x128xf32> to vector<128x128xbf16>
    %cst_8 = arith.constant dense<0.000000e+00> : vector<1x128xf32>
    %11 = tpu.matmul %9, %10, %cst_8 {dimension_numbers = #tpu.dot_dimension_numbers<[1], [1], [0], [0], [0, 0, 1, 0], [], []>} : vector<1x128xbf16>, vector<128x128xbf16>, vector<1x128xf32> -> vector<1x128xf32>
    %c0_9 = arith.constant 0 : index
    %c0_10 = arith.constant 0 : index
    %12 = vector.load %arg5[%c0_9, %c0_10] : memref<1x1xf32, #tpu.memory_space<vmem>>, vector<1x1xf32>
    %13 = vector.broadcast %12 : vector<1x1xf32> to vector<1x128xf32>
    %14 = arith.addf %11, %13 : vector<1x128xf32>
    %c0_11 = arith.constant 0 : index
    %c0_12 = arith.constant 0 : index
    %15 = vector.load %arg6[%c0_11, %c0_12] : memref<1x128xf32, #tpu.memory_space<vmem>>, vector<1x128xf32>
    tpu.vector_store %arg6[%c0_11, %c0_12], %14 {strides = array<i32>} : memref<1x128xf32, #tpu.memory_space<vmem>>, vector<1x128xf32>,
    return
  }
  func.func @transform_0(%arg0: i32) -> (i32, i32) {
    %c0_i32 = arith.constant 0 : i32
    %c0_i32_0 = arith.constant 0 : i32
    return %arg0, %c0_i32 : i32, i32
  }
  func.func @transform_1(%arg0: i32) -> (i32, i32) {
    %c0_i32 = arith.constant 0 : i32
    %c0_i32_0 = arith.constant 0 : i32
    %c0_i32_1 = arith.constant 0 : i32
    return %c0_i32, %c0_i32_0 : i32, i32
  }
  func.func @transform_2(%arg0: i32) -> (i32, i32) {
    %c0_i32 = arith.constant 0 : i32
    %c0_i32_0 = arith.constant 0 : i32
    %c0_i32_1 = arith.constant 0 : i32
    return %c0_i32, %c0_i32_0 : i32, i32
  }
  func.func @transform_3(%arg0: i32) -> (i32, i32) {
    %c0_i32 = arith.constant 0 : i32
    %c0_i32_0 = arith.constant 0 : i32
    %c0_i32_1 = arith.constant 0 : i32
    return %c0_i32, %c0_i32_0 : i32, i32
  }
  func.func @transform_4(%arg0: i32) -> (i32, i32) {
    %c0_i32 = arith.constant 0 : i32
    %c0_i32_0 = arith.constant 0 : i32
    %c0_i32_1 = arith.constant 0 : i32
    return %c0_i32, %c0_i32_0 : i32, i32
  }
  func.func @transform_5(%arg0: i32) -> (i32, i32) {
    %c0_i32 = arith.constant 0 : i32
    %c0_i32_0 = arith.constant 0 : i32
    return %c0_i32, %arg0 : i32, i32
  }
}

</mosaic_0001>

<bundles_post_ra>
// kernel: value_net_forward.1
= control target key start
LH: loop header
LB: loop body
LE: loop exit
PB: predicated region body
PF: predicated region fallthrough
CT: control target
= control target key end

     0   :  { %s892_s0 = inlined_call_operand.vmem [shape: f32[256,16], index: 0, kind: input, shape index: {}]   ;;  %s893_s1 = inlined_call_operand.vmem [shape: bf16[16,128], index: 1, kind: input, shape index: {}]   ;;  %s894_s2 = inlined_call_operand.vmem [shape: f32[1,128], index: 2, kind: input, shape index: {}]   ;;  %s895_s3 = inlined_call_operand.vmem [shape: bf16[1,128], index: 3, kind: input, shape index: {}]   ;;  %s896_s4 = inlined_call_operand.<no memory space> [shape: f32[1,1], index: 4, kind: input, shape index: {}]   ;;  %s897_s5 = inlined_call_operand.hbm [shape: f32[1,256], index: 5, kind: output, shape index: {}]  }
   0x1   :  { %v10_v0 = vstv %s896_s4 }
   0x2   :  { %11 = vst [vmem:[#allocation2] sm:$0x1] %v10_v0 }
   0x3   :  { %12 = vsyncpa [#allocation4], 0 }
   0x4   :  { %14 = vsyncpa [#allocation4 + $0x1], 0  ;;  %s750_s20 = smov 0   ;;  %s752_s21 = smov 0  }
   0x5   :  { %s754_s22 = smov 0   ;;  %s756_s23 = smov 0  }
   0x6 LB: > { %s531_s4 = sadd.s32 4294967295, %s711_s23   ;;  %s532_s24 = sadd.s32 4294967294, %s711_s23   ;;  %s711_s23 = sphi %s756_s23, %s903_s23   ;;  %s707_s22 = sphi %s754_s22, %s902_s22   ;;  %s703_s21 = sphi %s752_s21, %s901_s21   ;;  %s699_s20 = sphi %s750_s20, %s900_s20  }
   0x7   : > { %s773_s25 = sadd.s32 1, %s711_s23   ;;  %s137_s26 = sadd.s32 1, %s707_s22 }
   0x8   : > { %s134_s27 = ssub.s32 %s711_s23, %s773_s25  ;;  %p147_p0 = scmp.ne.s32.totalorder %s707_s22, %s703_s21 }
   0x9   : > { %p135_p1 = scmp.eq.s32.totalorder %s134_s27, 0  ;;  %p148_p2 = scmp.eq.s32.totalorder %s531_s4, 1 }
   0xa   : > { %p153_p3 = scmp.ne.s32.totalorder %s703_s21, %s699_s20  ;;  %p154_p4 = scmp.eq.s32.totalorder %s532_s24, 1 }
   0xb   : > { %s783_s28 = scalar_select %p135_p1, %s707_s22, %s137_s26  }
   0xc   : > { %p785_p5 = por %p148_p2, %p147_p0  ;;  %p789_p6 = por %p154_p4, %p153_p3 }
   0xd   : > { %p535_p7 = scmp.ge.s32.totalorder %s711_s23, 1  ;;  %p193_p8 = scmp.lt.s32.totalorder %s711_s23, 3 }
   0xf   : > { %p194_p9 = pnand %p535_p7, %p193_p8 }
  0x10   : > { %s798_s8 = sshll.u32 (!%p194_p9), %s531_s4, 4  ;;  %s218_s18 = sand.u32 (!%p194_p9), 1, %s703_s21  }
  0x11   : > { %197 = sbr.rel (%p194_p9) target bundleno = 529 (0x211), region = 40  ;;  %p221_p10 = scmp.lt.s32.totalorder (!%p194_p9), %s798_s8, 31 }
  0x12   : > { %s219_s19 = scalar_lea.vmem (!%p194_p9), [#allocation3], %s218_s18  ;;  %s851_s27 = scalar_lea.hbm (!%p194_p9), %s897_s5, %s798_s8 }
  0x13   : > { %s477_s4 = sshll.u32 (!%p194_p9), %s219_s19, 4  ;;  %s465_s6 = scalar_lea.sflag (!%p194_p9), [#allocation4], %s218_s18  ;;  %s853_s4 = int_to_ptr.vmem [resolvable:$true] %s477_s4 }
  0x14   : > { %s651_s7 = scalar_lea.vmem (!%p194_p9), %s853_s4, 16 }
  0x15   : > { %p652_p11 = scmp.ne.s32.totalorder (!%p194_p9), %s853_s4, %s651_s7 }
  0x16   : > { %v650_v1 = vld [vmem:[%s893_s1] sm:$0xff]   ;;  %s222_s9 = scalar_select %p221_p10, %s798_s8, 31  ;;  %vm266_vm0 = vcmask 130048   ;;  %v713_v26 = vmov 0.0   ;;  %vm714_vm1 = vmmov 0   ;;  %v715_v28 = vmov 0  }
  0x17   : > { %569 = vmatprep.subr.bf16.mxu0 %v650_v1  ;;  %587 = vmatprep.subr.bf16.mxu1 %v713_v26  ;;  %v413_v27 = vld [vmem:[#allocation2] sm:$0x1]  ;;  %p653_p12 = pnand %p652_p11, %p785_p5 }
  0x18   : > { %570 = vmatpush3.bf16.msra.mxu0 %v650_v1  ;;  %s537_s10 = sshll.u32 %s222_s9, 3  ;;  %603 = vmatprep.mubr.msk.bf16.mxu1 %vm714_vm1, %v713_v26  ;;  %v538_v30 = vld [vmem:[%s894_s2] ss:$0 sm:$0xff]  ;;  %s716_s9 = smov [#allocation3]  }
  0x19   : > { %s805_s13 = scalar_lea.vmem %s892_s0, %s537_s10  ;;  %649 = vset.pattern.permute.xlu0 %v715_v28  ;;  %p654_p13 = pneg %p653_p12 }
  0x1a   : > { %v227_v2 = vld [vmem:[%s805_s13] sm:$0xff]  ;;  %v228_v3 = vld [vmem:[%s805_s13 + $0x8] sm:$0xff]  ;;  %v229_v4 = vld [vmem:[%s805_s13 + $0x10] sm:$0xff]  ;;  %416 = vperm.xlu0 %649, %v413_v27   ;;  %s655_s10 = sshll.u32 %s716_s9, 4  ;;  %s656_s10 = int_to_ptr.vmem [resolvable:$false] %s655_s10 }
  0x1b   : > { %v243_v5 = vpack.c.bf16 %v228_v3, %v227_v2  ;;  %v230_v6 = vld [vmem:[%s805_s13 + $0x18] sm:$0xff]  ;;  %v231_v7 = vld [vmem:[%s805_s13 + $0x20] sm:$0xff]  ;;  %v232_v8 = vld [vmem:[%s805_s13 + $0x28] sm:$0xff]  ;;  %s657_s11 = scalar_lea.vmem %s656_s10, 32  ;;  %p658_p0 = scmp.lt.s32.totalorder %s853_s4, %s656_s10 }
  0x1c   : > { %v244_v9 = vpack.c.bf16 %v230_v6, %v229_v4  ;;  %v245_v10 = vpack.c.bf16 %v232_v8, %v231_v7  ;;  %v233_v11 = vld [vmem:[%s805_s13 + $0x30] sm:$0xff]  ;;  %v234_v12 = vld [vmem:[%s805_s13 + $0x38] sm:$0xff]  ;;  %v235_v13 = vld [vmem:[%s805_s13 + $0x40] sm:$0xff]  ;;  %p659_p1 = scmp.lt.s32.totalorder %s657_s11, %s651_s7 }
  0x1d   : > { %571 = vmatprep.mubr.msk.bf16.mxu0 %vm266_vm0, %v243_v5  ;;  %v236_v14 = vld [vmem:[%s805_s13 + $0x48] sm:$0xff]  ;;  %v246_v15 = vpack.c.bf16 %v234_v12, %v233_v11  ;;  %v237_v17 = vld [vmem:[%s805_s13 + $0x50] sm:$0xff]  ;;  %v238_v18 = vld [vmem:[%s805_s13 + $0x58] sm:$0xff] }
  0x1e   : > { %572 = vmatmul.mubr.msk.bf16.vlgmr.msra.gmra.mxu0 %vm266_vm0, %v244_v9  ;;  %v247_v16 = vpack.c.bf16 %v236_v14, %v235_v13  ;;  %v239_v19 = vld [vmem:[%s805_s13 + $0x60] sm:$0xff]  ;;  %v240_v20 = vld [vmem:[%s805_s13 + $0x68] sm:$0xff]  ;;  %v248_v21 = vpack.c.bf16 %v238_v18, %v237_v17  ;;  %v241_v23 = vld [vmem:[%s805_s13 + $0x70] sm:$0xff]  ;;  %p660_p2 = por %p659_p1, %p658_p0 }
  0x1f   : > { %575 = vmatprep.mubr.msk.bf16.mxu0 %vm266_vm0, %v245_v10  ;;  %v249_v22 = vpack.c.bf16 %v240_v20, %v239_v19  ;;  %v242_v24 = vld [vmem:[%s805_s13 + $0x78] sm:$0xff] }
  0x20   : > { %v250_v25 = vpack.c.bf16 %v242_v24, %v241_v23  ;;  %v419_v23 = vlaneseq  ;;  %p661_p3 = pnand %p660_p2, %p654_p13 }
  0x22   : > { %v420_v24 = vshrl.u32 %v419_v23, 7 }
  0x26   : > { %576 = vmatmul.mubr.msk.bf16.gmra.mxu0 %vm266_vm0, %v246_v15 }
  0x27   : > { %579 = vmatprep.mubr.msk.bf16.mxu0 %vm266_vm0, %v247_v16 }
  0x2e   : > { %580 = vmatmul.mubr.msk.bf16.gmra.mxu0 %vm266_vm0, %v248_v21 }
  0x2f   : > { %583 = vmatprep.mubr.msk.bf16.mxu0 %vm266_vm0, %v249_v22  ;;  %v404_v22 = vld [vmem:[%s895_s3] sm:$0x1] }
  0x36   : > { %584 = vmatmul.mubr.msk.bf16.gmra.mxu0 %vm266_vm0, %v250_v25  ;;  %v421_v25 = vsub.s32 0, %v420_v24 }
  0x95   : > { %v417_v27 = vpop.permute.xlu0 %416 }
  0x96   : > { %v422_v28 = vrot.slane %v417_v27, %v421_v25 }
  0xde   : > { %v573_v29 = vpop.f32.mrf.mxu0 }
  0xdf   : > { %v334_v32 = vadd.f32 %v573_v29, %v538_v30 }
  0xe0   : > { %v325_v31 = vpop.f32.mrf.mxu0 }
  0xe1   : > { %v326_v34 = vadd.f32 %v538_v30, %v325_v31  ;;  %v390_v37 = vmax.f32 %v334_v32, 0.0 }
  0xe2   : > { %v574_v33 = vpop.f32.mrf.mxu0 }
  0xe3   : > { %v337_v35 = vadd.f32 %v574_v33, %v538_v30  ;;  %v388_v41 = vmax.f32 %v326_v34, 0.0 }
  0xe4   : > { %v328_v36 = vpop.f32.mrf.mxu0 }
  0xe5   : > { %v391_v38 = vmax.f32 %v337_v35, 0.0  ;;  %v329_v39 = vadd.f32 %v538_v30, %v328_v36 }
  0xe6   : > { %v577_v40 = vpop.f32.mrf.mxu0 }
  0xe7   : > { %v406_v42 = vpack.c.bf16 %v391_v38, %v390_v37  ;;  %v389_v43 = vmax.f32 %v329_v39, 0.0  ;;  %v350_v13 = vadd.f32 %v577_v40, %v538_v30 }
  0xe8   : > { %v341_v44 = vpop.f32.mrf.mxu0 }
  0xe9   : > { %v405_v45 = vpack.c.bf16 %v389_v43, %v388_v41  ;;  %v394_v15 = vmax.f32 %v350_v13, 0.0  ;;  %v342_v18 = vadd.f32 %v538_v30, %v341_v44 }
  0xea   : > { %v578_v46 = vpop.f32.mrf.mxu0 }
  0xeb   : > { %v353_v11 = vadd.f32 %v578_v46, %v538_v30  ;;  %v392_v20 = vmax.f32 %v342_v18, 0.0 }
  0xec   : > { %v344_v47 = vpop.f32.mrf.mxu0 }
  0xed   : > { %v395_v14 = vmax.f32 %v353_v11, 0.0  ;;  %v345_v17 = vadd.f32 %v538_v30, %v344_v47 }
  0xee   : > { %v581_v48 = vpop.f32.mrf.mxu0 }
  0xef   : > { %v366_v3 = vadd.f32 %v581_v48, %v538_v30  ;;  %v408_v16 = vpack.c.bf16 %v395_v14, %v394_v15  ;;  %v393_v19 = vmax.f32 %v345_v17, 0.0 }
  0xf0   : > { %v357_v49 = vpop.f32.mrf.mxu0 }
  0xf1   : > { %v398_v5 = vmax.f32 %v366_v3, 0.0  ;;  %v358_v8 = vadd.f32 %v538_v30, %v357_v49  ;;  %v407_v21 = vpack.c.bf16 %v393_v19, %v392_v20 }
  0xf2   : > { %v582_v50 = vpop.f32.mrf.mxu0 }
  0xf3   : > { %v369_v1 = vadd.f32 %v582_v50, %v538_v30  ;;  %v396_v10 = vmax.f32 %v358_v8, 0.0 }
  0xf4   : > { %v360_v51 = vpop.f32.mrf.mxu0 }
  0xf5   : > { %v399_v4 = vmax.f32 %v369_v1, 0.0  ;;  %v361_v7 = vadd.f32 %v538_v30, %v360_v51 }
  0xf6   : > { %v585_v52 = vpop.f32.mrf.mxu0 }
  0xf7   : > { %v382_v54 = vadd.f32 %v585_v52, %v538_v30  ;;  %v410_v6 = vpack.c.bf16 %v399_v4, %v398_v5  ;;  %v397_v9 = vmax.f32 %v361_v7, 0.0 }
  0xf8   : > { %v373_v53 = vpop.f32.mrf.mxu0 }
  0xf9   : > { %v402_v58 = vmax.f32 %v382_v54, 0.0  ;;  %v374_v62 = vadd.f32 %v538_v30, %v373_v53  ;;  %v409_v12 = vpack.c.bf16 %v397_v9, %v396_v10 }
  0xfa   : > { %v586_v55 = vpop.f32.mrf.mxu0 }
  0xfb   : > { %v385_v56 = vadd.f32 %v586_v55, %v538_v30  ;;  %v400_v0 = vmax.f32 %v374_v62, 0.0 }
  0xfc   : > { %v376_v57 = vpop.f32.mrf.mxu0 }
  0xfd   : > { %v403_v59 = vmax.f32 %v385_v56, 0.0  ;;  %v377_v60 = vadd.f32 %v538_v30, %v376_v57 }
  0xff   : > { %v412_v61 = vpack.c.bf16 %v403_v59, %v402_v58  ;;  %v401_v63 = vmax.f32 %v377_v60, 0.0 }
 0x101   : > { %588 = vmatpush3.bf16.xpose.msra.mxu1 %v412_v61  ;;  %v411_v2 = vpack.c.bf16 %v401_v63, %v400_v0 }
 0x102   : > { %589 = vmatprep.subr.bf16.mxu1 %v713_v26 }
 0x109   : > { %590 = vmatpush3.bf16.xpose.msra.mxu1 %v411_v2 }
 0x10a   : > { %591 = vmatprep.subr.bf16.mxu1 %v713_v26 }
 0x111   : > { %592 = vmatpush3.bf16.xpose.msra.mxu1 %v410_v6 }
 0x112   : > { %593 = vmatprep.subr.bf16.mxu1 %v713_v26 }
 0x119   : > { %594 = vmatpush3.bf16.xpose.msra.mxu1 %v409_v12 }
 0x11a   : > { %595 = vmatprep.subr.bf16.mxu1 %v713_v26 }
 0x121   : > { %596 = vmatpush3.bf16.xpose.msra.mxu1 %v408_v16 }
 0x122   : > { %597 = vmatprep.subr.bf16.mxu1 %v713_v26 }
 0x129   : > { %598 = vmatpush3.bf16.xpose.msra.mxu1 %v407_v21 }
 0x12a   : > { %599 = vmatprep.subr.bf16.mxu1 %v713_v26 }
 0x131   : > { %600 = vmatpush3.bf16.xpose.msra.mxu1 %v406_v42 }
 0x132   : > { %601 = vmatprep.subr.bf16.mxu1 %v713_v26 }
 0x139   : > { %602 = vmatpush3.bf16.xpose.msra.mxu1 %v405_v45 }
 0x140   : > { %604 = vmatmul.mubr.bf16.vlgmr.msra.gmra.mxu1 %v404_v22 }
 0x200   : > { %v457_v29 = vpop.f32.mrf.mxu1 }
 0x201   : > { %v458_v30 = vadd.f32 %v457_v29, %v422_v28 }
 0x202   : > { %v605_v26 = vpop.f32.mrf.mxu1 }
 0x203   : > { %463 = vst [vmem:[%s219_s19] sm:$0x1] %v458_v30 }
 0x204   : > { %v460_v31 = vpop.f32.mrf.mxu1 }
 0x205   : > { %664 = shalt.err (!%p661_p3)
}
 0x206   : > { %s665_s8 = scalar_lea.hbm %s851_s27, 16  ;;  %s669_s14 = scalar_lea.hbm %s897_s5, 32 }
 0x207   : > { %p666_p4 = scmp.ne.s32.totalorder %s851_s27, %s665_s8  ;;  %p670_p9 = scmp.lt.s32.totalorder %s851_s27, %s897_s5 }
 0x208   : > { %p671_p10 = scmp.lt.s32.totalorder %s669_s14, %s665_s8 }
 0x209   : > { %p667_p7 = pnand %p666_p4, %p785_p5 }
 0x20a   : > { %p672_p11 = por %p671_p10, %p670_p9 }
 0x20b   : > { %p668_p8 = pneg %p667_p7 }
 0x20d   : > { %p673_p12 = pnand %p672_p11, %p668_p8 }
 0x20f   : > { %676 = shalt.err (!%p673_p12)
}
 0x210   : > { %607 = dma.vmem_to_hbm [thread:$0]  (%p785_p5), %s853_s4, 16, %s851_s27, %s465_s6   ;;  %v606_v32 = vpop.f32.mrf.mxu1 }
 0x211 PF: > { %p613_p13 = scmp.ge.s32.totalorder %s711_s23, 2  ;;  %s489_s17 = sand.u32 1, %s699_s20  }
 0x212   : > { %s490_s18 = scalar_lea.sflag [#allocation4], %s489_s17 }
 0x213   : > { %p610_p0 = pnand %p613_p13, %p789_p6 }
 0x215   : > { %p611_p1 = pneg %p610_p0 }
 0x217   : > { %694 = dma.done.wait (%p611_p1), %s490_s18, 16  }
 0x218   : > { %696 = vsyncadd (%p611_p1), %s490_s18, 4294967280  ;;  %p17_p2 = scmp.ge.s32.totalorder %s773_s25, 4   ;;  %s900_s20 = smov %s703_s21 }
 0x219   : > { %s901_s21 = smov %s707_s22  ;;  %s902_s22 = smov %s783_s28 }
 0x21a   : > { %s903_s23 = smov %s773_s25  ;;  %19 = sbr.rel (!%p17_p2) target bundleno = 6 (0x6), region = 75 }
 0x21f   :  { %494 = vsyncpa [#allocation4], 1 }
 0x220   :  { %496 = vsyncpa [#allocation4 + $0x1], 1 }

</bundles_post_ra>
